<compile_context>
chip_gen: v6e
topology: v6e:2x2x1
jax: 0.10.0
libtpu: 0.0.40
codegen_flags: <defaults>
</compile_context>

<pallas_src>
import functools
import math

import jax
import jax.numpy as jnp
from jax.experimental import pallas as pl
from jax.experimental.pallas import tpu as pltpu


def _round_up(n, m):
    return ((n + m - 1) // m) * m


def _vmem_capacity_bytes():
    """Per-core VMEM capacity (generation aware), with a conservative fallback."""
    try:
        return int(pltpu.get_tpu_info().vmem_capacity_bytes)
    except Exception:
        return 64 * 1024 * 1024  # v7x per-TensorCore VMEM (smallest of the fleet)


def _const_block_spec(block_shape, index_map):
    """Grid-invariant input: single-buffered (no prefetch needed) to save VMEM."""
    try:
        return pl.BlockSpec(block_shape, index_map, pipeline_mode=pl.Buffered(1))
    except Exception:  # older BlockSpec without pipeline_mode: fall back to default
        return pl.BlockSpec(block_shape, index_map)


def _choose_tb(bp, requested):
    """Pick the batch row-tile.

    Large tiles keep the per-layer weight stream above the HBM ridge (v6e ~650 FLOP/B,
    v7x ~310 FLOP/B, v5e ~240 FLOP/B); >=2 tiles lets v7x's second TensorCore work;
    balancing the tile count avoids a mostly-padded remainder tile.
    """
    tb = max(8, min(int(requested), bp))
    if bp >= 256:                      # keep >= 2 batch tiles for megacore when possible
        tb = min(tb, max(128, bp // 2))
    n_tiles = -(-bp // tb)
    return _round_up(-(-bp // n_tiles), 8)   # balanced, sublane aligned


def _act_layernorm(h, p, *, use_relu, eps, inv_n):
    """bias + activation + LayerNorm on an f32 matmul result.

    h: (tb, Hp) f32.  p: (4, Hp) f32 = [bias, gamma, beta, lane_mask].
    Padded lanes of h are exactly 0 (zero weight cols + zero bias), so the sum is
    already over the true features; only the centered term needs the mask.
    """
    h = h + p[0:1, :]
    h = jnp.maximum(h, 0.0) if use_relu else jnp.tanh(h)
    mean = jnp.sum(h, axis=-1, keepdims=True) * inv_n
    centered = (h - mean) * p[3:4, :]
    var = jnp.sum(centered * centered, axis=-1, keepdims=True) * inv_n
    normed = centered * jax.lax.rsqrt(var + eps)
    return normed * p[1:2, :] + p[2:3, :]     # padded lanes -> 0 (gamma = beta = 0)


# ----------------------------------------------------------------------------------
# Primary kernel: all weights VMEM-resident, in-kernel loop over hidden layers.
# grid = (batch_tiles,), "parallel".
# ----------------------------------------------------------------------------------
def _mlp_resident_kernel(x_ref, w1_ref, p1_ref, wh_ref, ph_ref, o_ref, *,
                         use_relu, eps, h_true, n_hidden):
    inv_n = 1.0 / float(h_true)
    ln = functools.partial(_act_layernorm, use_relu=use_relu, eps=eps, inv_n=inv_n)
    mm_dtype = w1_ref.dtype

    # fc1: x tile is already bf16 -> straight onto the MXU, f32 accumulation.
    h = jnp.dot(x_ref[...], w1_ref[...], preferred_element_type=jnp.float32)
    a = ln(h, p1_ref[...])

    def layer(i, a):
        h = jnp.dot(a.astype(mm_dtype), wh_ref[i], preferred_element_type=jnp.float32)
        return ln(h, ph_ref[i])

    if 0 < n_hidden <= 8:
        for i in range(n_hidden):          # small, static depth: unroll for the scheduler
            a = layer(i, a)
    elif n_hidden > 8:
        a = jax.lax.fori_loop(0, n_hidden, layer, a)

    o_ref[...] = a.astype(o_ref.dtype)


def _forward_resident(x_p, w1, p1, wh, ph, *, use_relu, eps, h_true, layer_n, tb,
                      vmem_limit):
    bp, din_p = x_p.shape
    h_p = w1.shape[1]
    L = wh.shape[0]
    n_tiles = pl.cdiv(bp, tb)

    kernel = functools.partial(_mlp_resident_kernel, use_relu=use_relu, eps=eps,
                               h_true=h_true, n_hidden=layer_n)

    rows = n_tiles * tb
    flops = int(2 * rows * h_p * (din_p + layer_n * h_p))
    trans = int(rows * (layer_n + 1) * (1 + (0 if use_relu else h_p)))
    bytes_accessed = int(x_p.size * x_p.dtype.itemsize
                         + w1.size * w1.dtype.itemsize + p1.size * p1.dtype.itemsize
                         + wh.size * wh.dtype.itemsize + ph.size * ph.dtype.itemsize
                         + bp * h_p * 4)

    return pl.pallas_call(
        kernel,
        out_shape=jax.ShapeDtypeStruct((bp, h_p), jnp.float32),
        grid_spec=pltpu.PrefetchScalarGridSpec(
            num_scalar_prefetch=0,
            grid=(n_tiles,),
            in_specs=[
                pl.BlockSpec((tb, din_p), lambda i: (i, 0)),            # x tile (bf16)
                _const_block_spec((din_p, h_p), lambda i: (0, 0)),      # fc1 weight
                _const_block_spec((4, h_p), lambda i: (0, 0)),          # fc1 bias/gamma/beta/mask
                _const_block_spec((L, h_p, h_p), lambda i: (0, 0, 0)),  # hidden weight stack
                _const_block_spec((L, 4, h_p), lambda i: (0, 0, 0)),    # hidden params
            ],
            out_specs=pl.BlockSpec((tb, h_p), lambda i: (i, 0)),
        ),
        compiler_params=pltpu.CompilerParams(
            dimension_semantics=("parallel",),
            vmem_limit_bytes=vmem_limit),
        cost_estimate=pl.CostEstimate(flops=flops, transcendentals=trans,
                                      bytes_accessed=bytes_accessed),
    )(x_p, w1, p1, wh, ph)


# ----------------------------------------------------------------------------------
# Fallback kernel: weight stack too big for VMEM -> stream one hidden layer per grid
# step; activation stays resident in a bf16 VMEM scratch across the layer axis.
# grid = (batch_tiles, layer_N + 1), ("parallel", "arbitrary").
# ----------------------------------------------------------------------------------
def _mlp_streamed_kernel(x_ref, w1_ref, p1_ref, wh_ref, ph_ref, o_ref, act_ref, *,
                         use_relu, eps, h_true):
    l = pl.program_id(1)
    last = pl.num_programs(1) - 1
    inv_n = 1.0 / float(h_true)
    ln = functools.partial(_act_layernorm, use_relu=use_relu, eps=eps, inv_n=inv_n)

    @pl.when(l == 0)
    def _():
        h = jnp.dot(x_ref[...], w1_ref[...], preferred_element_type=jnp.float32)
        a = ln(h, p1_ref[...])
        act_ref[...] = a.astype(act_ref.dtype)   # bf16 carry (next matmul eats bf16)

        @pl.when(last == 0)
        def _():
            o_ref[...] = a.astype(o_ref.dtype)   # write from the fresh f32 result

    @pl.when(l > 0)
    def _():
        h = jnp.dot(act_ref[...], wh_ref[0], preferred_element_type=jnp.float32)
        a = ln(h, ph_ref[0])
        act_ref[...] = a.astype(act_ref.dtype)

        @pl.when(l == last)
        def _():
            o_ref[...] = a.astype(o_ref.dtype)


def _forward_streamed(x_p, w1, p1, wh, ph, *, use_relu, eps, h_true, layer_n, tb,
                      vmem_limit):
    bp, din_p = x_p.shape
    h_p = w1.shape[1]
    n_tiles = pl.cdiv(bp, tb)
    n_steps = layer_n + 1

    kernel = functools.partial(_mlp_streamed_kernel, use_relu=use_relu, eps=eps,
                               h_true=h_true)

    rows = n_tiles * tb
    flops = int(2 * rows * h_p * (din_p + layer_n * h_p))
    trans = int(rows * n_steps * (1 + (0 if use_relu else h_p)))
    bytes_accessed = int(x_p.size * x_p.dtype.itemsize
                         + w1.size * w1.dtype.itemsize + p1.size * p1.dtype.itemsize
                         + n_tiles * (wh.size * wh.dtype.itemsize
                                      + ph.size * ph.dtype.itemsize)
                         + bp * h_p * 4)

    return pl.pallas_call(
        kernel,
        out_shape=jax.ShapeDtypeStruct((bp, h_p), jnp.float32),
        grid_spec=pltpu.PrefetchScalarGridSpec(
            num_scalar_prefetch=0,
            grid=(n_tiles, n_steps),
            in_specs=[
                pl.BlockSpec((tb, din_p), lambda i, l: (i, 0)),
                _const_block_spec((din_p, h_p), lambda i, l: (0, 0)),
                _const_block_spec((4, h_p), lambda i, l: (0, 0)),
                # hidden layer l uses stack entry l-1; clamp so l==0 prefetches entry 0
                pl.BlockSpec((1, h_p, h_p), lambda i, l: (jnp.maximum(l - 1, 0), 0, 0)),
                pl.BlockSpec((1, 4, h_p), lambda i, l: (jnp.maximum(l - 1, 0), 0, 0)),
            ],
            out_specs=pl.BlockSpec((tb, h_p), lambda i, l: (i, 0)),
            scratch_shapes=[pltpu.VMEM((tb, h_p), w1.dtype)],   # bf16 resident activation
        ),
        compiler_params=pltpu.CompilerParams(
            dimension_semantics=("parallel", "arbitrary"),
            vmem_limit_bytes=vmem_limit),
        cost_estimate=pl.CostEstimate(flops=flops, transcendentals=trans,
                                      bytes_accessed=bytes_accessed),
    )(x_p, w1, p1, wh, ph)


def mlp_layer_forward(x_p, w1, p1, wh, ph, *, use_relu, eps, h_true, layer_n, tb):
    """Dispatch: hold the whole weight stack in VMEM when it fits, else stream it."""
    bp, din_p = x_p.shape
    h_p = w1.shape[1]
    L = wh.shape[0]
    cap = _vmem_capacity_bytes()

    resident_need = (2 * tb * din_p * 2 + 2 * tb * h_p * 4       # x / out tiles (2-buf)
                     + din_p * h_p * 2 + 4 * h_p * 4             # fc1 (1-buf)
                     + L * h_p * h_p * 2 + L * 4 * h_p * 4)      # hidden stack (1-buf)
    if resident_need <= int(0.7 * cap):
        limit = min(int(0.9 * cap), max(resident_need + (8 << 20), 32 << 20))
        return _forward_resident(x_p, w1, p1, wh, ph, use_relu=use_relu, eps=eps,
                                 h_true=h_true, layer_n=layer_n, tb=tb, vmem_limit=limit)

    streamed_need = (2 * tb * din_p * 2 + 2 * tb * h_p * 4
                     + din_p * h_p * 2 + 4 * h_p * 4
                     + 2 * (h_p * h_p * 2 + 4 * h_p * 4)         # one layer block (2-buf)
                     + tb * h_p * 2)                             # bf16 activation scratch
    limit = min(int(0.9 * cap), max(streamed_need + (8 << 20), 32 << 20))
    return _forward_streamed(x_p, w1, p1, wh, ph, use_relu=use_relu, eps=eps,
                             h_true=h_true, layer_n=layer_n, tb=tb, vmem_limit=limit)


def _init_weight(key, din, dout, use_orthogonal, gain):
    # Same init *scheme* as the torch module (orthogonal / xavier-uniform with gain).
    # TODO(synk): bit-exact parity with torch's RNG stream is not reproducible in JAX.
    if use_orthogonal:
        return jax.nn.initializers.orthogonal(scale=gain)(key, (din, dout), jnp.float32)
    bound = gain * math.sqrt(6.0 / (din + dout))
    return jax.random.uniform(key, (din, dout), jnp.float32, minval=-bound, maxval=bound)


class MLPLayerPallas:
    """JAX/Pallas re-implementation of the PyTorch MLPLayer forward pass."""

    def __init__(self, input_dim, hidden_size, layer_N, use_orthogonal, use_ReLU, key,
                 matmul_dtype=jnp.bfloat16, eps=1e-5):
        self.layer_N = int(layer_N)
        self.use_relu = bool(use_ReLU)
        self.hidden = int(hidden_size)
        self.din = int(input_dim)
        self.eps = float(eps)
        self.matmul_dtype = matmul_dtype

        # Lane-dense padded feature dims (multiples of 128).
        self.din_p = _round_up(self.din, 128)
        self.h_p = _round_up(self.hidden, 128)

        gain = math.sqrt(2.0) if self.use_relu else 5.0 / 3.0
        keys = jax.random.split(key, self.layer_N + 1)

        # fc1: weight [Din_p, Hp] (bf16, zero-padded); packed params [4, Hp] =
        # [bias, gamma, beta, lane_mask] (padded lanes all zero except the mask row).
        w1 = _init_weight(keys[0], self.din, self.hidden, use_orthogonal, gain)
        self.w1 = (jnp.zeros((self.din_p, self.h_p), jnp.float32)
                   .at[:self.din, :self.hidden].set(w1)).astype(matmul_dtype)
        self.p1 = (jnp.zeros((4, self.h_p), jnp.float32)
                   .at[1, :self.hidden].set(1.0)
                   .at[3, :self.hidden].set(1.0))

        # Hidden stack: [L, Hp, Hp] + packed params [L, 4, Hp] (>=1 dummy entry if L==0).
        L = max(self.layer_N, 1)
        wh = jnp.zeros((L, self.h_p, self.h_p), jnp.float32)
        for i in range(self.layer_N):
            wi = _init_weight(keys[1 + i], self.hidden, self.hidden, use_orthogonal, gain)
            wh = wh.at[i, :self.hidden, :self.hidden].set(wi)
        self.wh = wh.astype(matmul_dtype)
        self.ph = (jnp.zeros((L, 4, self.h_p), jnp.float32)
                   .at[:, 1, :self.hidden].set(1.0)
                   .at[:, 3, :self.hidden].set(1.0))

    def __call__(self, x, *, block_rows=512):
        # block_rows: requested batch row tile. 512 keeps the per-layer weight stream
        # above the HBM ridge on v6e/v7x; _choose_tb caps/balances it per batch size.
        B, Din = x.shape
        assert Din == self.din
        bp = _round_up(B, 8)                       # sublane-align only; no full-tile padding
        tb = _choose_tb(bp, block_rows)
        # x in the matmul dtype (bf16): halves DMA bytes and the resident x-tile VMEM.
        x_p = jnp.zeros((bp, self.din_p), self.matmul_dtype)
        x_p = x_p.at[:B, :Din].set(x.astype(self.matmul_dtype))
        out = mlp_layer_forward(x_p, self.w1, self.p1, self.wh, self.ph,
                                use_relu=self.use_relu, eps=self.eps,
                                h_true=self.hidden, layer_n=self.layer_N, tb=tb)
        return out[:B, :self.hidden]

    def reference(self, x):
        """Pure-JAX forward mirroring the kernel math (bf16 matmul, f32 LayerNorm)."""
        H, Din = self.hidden, self.din

        def block(a, w, p):
            h = jnp.dot(a.astype(self.matmul_dtype), w,
                        preferred_element_type=jnp.float32) + p[0]
            h = jnp.maximum(h, 0.0) if self.use_relu else jnp.tanh(h)
            mean = jnp.mean(h, axis=-1, keepdims=True)
            c = h - mean
            var = jnp.mean(c * c, axis=-1, keepdims=True)
            return c * jax.lax.rsqrt(var + self.eps) * p[1] + p[2]

        a = block(x.astype(jnp.float32), self.w1[:Din, :H], self.p1[:, :H])
        for i in range(self.layer_N):
            a = block(a, self.wh[i, :H, :H], self.ph[i, :, :H])
        return a


if __name__ == "__main__":
    key = jax.random.PRNGKey(0)
    k_x, k_p = jax.random.split(key)

    batch = 16
    input_dim = 24
    hidden_size = 32
    layer_N = 2

    x = jax.random.normal(k_x, (batch, input_dim), jnp.float32)

    model = MLPLayerPallas(input_dim, hidden_size, layer_N,
                           use_orthogonal=True, use_ReLU=True, key=k_p)

    out = jax.block_until_ready(model(x))
    assert out.shape == (batch, hidden_size)
    assert bool(jnp.all(jnp.isfinite(out)))

    ref = jax.block_until_ready(model.reference(x))
    max_err = float(jnp.max(jnp.abs(out - ref)))
    assert max_err < 1e-3, f"kernel/reference mismatch: {max_err}"

    print("KERNEL_OK")
</pallas_src>

<mosaic_0001>
module attributes {stable_mosaic.version = 11 : i64} {
  func.func @_mlp_resident_kernel(%arg0: i32, %arg1: memref<16x128xbf16, #tpu.memory_space<vmem>>, %arg2: memref<128x128xbf16, #tpu.memory_space<vmem>>, %arg3: memref<4x128xf32, #tpu.memory_space<vmem>>, %arg4: memref<2x128x128xbf16, #tpu.memory_space<vmem>>, %arg5: memref<2x4x128xf32, #tpu.memory_space<vmem>>, %arg6: memref<16x128xf32, #tpu.memory_space<vmem>>) attributes {dimension_semantics = [#tpu.dimension_semantics<parallel>], iteration_bounds = array<i64: 1>, scalar_prefetch = 0 : i64, scratch_operands = 0 : i64, tpu.core_type = #tpu.core_type<tc>, window_params = [{transform_indices = @transform_0, window_bounds = array<i64: 16, 128>}, {pipeline_mode = #tpu.pipeline_mode<synchronous>, transform_indices = @transform_1, window_bounds = array<i64: 128, 128>}, {pipeline_mode = #tpu.pipeline_mode<synchronous>, transform_indices = @transform_2, window_bounds = array<i64: 4, 128>}, {pipeline_mode = #tpu.pipeline_mode<synchronous>, transform_indices = @transform_3, window_bounds = array<i64: 2, 128, 128>}, {pipeline_mode = #tpu.pipeline_mode<synchronous>, transform_indices = @transform_4, window_bounds = array<i64: 2, 4, 128>}, {transform_indices = @transform_5, window_bounds = array<i64: 16, 128>}]} {
    %c0 = arith.constant 0 : index
    %c0_0 = arith.constant 0 : index
    %0 = vector.load %arg1[%c0, %c0_0] : memref<16x128xbf16, #tpu.memory_space<vmem>>, vector<16x128xbf16>
    %c0_1 = arith.constant 0 : index
    %c0_2 = arith.constant 0 : index
    %1 = vector.load %arg2[%c0_1, %c0_2] : memref<128x128xbf16, #tpu.memory_space<vmem>>, vector<128x128xbf16>
    %cst = arith.constant dense<0.000000e+00> : vector<16x128xf32>
    %2 = tpu.matmul %0, %1, %cst {dimension_numbers = #tpu.dot_dimension_numbers<[1], [0], [0], [1], [0, 0, 1, 1], [], []>} : vector<16x128xbf16>, vector<128x128xbf16>, vector<16x128xf32> -> vector<16x128xf32>
    %c0_3 = arith.constant 0 : index
    %c0_4 = arith.constant 0 : index
    %3 = vector.load %arg3[%c0_3, %c0_4] : memref<4x128xf32, #tpu.memory_space<vmem>>, vector<4x128xf32>
    %4 = vector.extract_strided_slice %3 {offsets = [0, 0], sizes = [1, 128], strides = [1, 1]} : vector<4x128xf32> to vector<1x128xf32>
    %5 = vector.broadcast %4 : vector<1x128xf32> to vector<16x128xf32>
    %6 = arith.addf %2, %5 : vector<16x128xf32>
    %cst_5 = arith.constant 0.000000e+00 : f32
    %7 = vector.broadcast %cst_5 : f32 to vector<16x128xf32>
    %8 = arith.maximumf %6, %7 : vector<16x128xf32>
    %cst_6 = arith.constant dense<0.000000e+00> : vector<16xf32>
    %9 = vector.multi_reduction <add>, %8, %cst_6 [1] : vector<16x128xf32> to vector<16xf32>
    %10 = vector.shape_cast %9 : vector<16xf32> to vector<16x1xf32>
    %cst_7 = arith.constant 3.125000e-02 : f32
    %11 = vector.broadcast %cst_7 : f32 to vector<16x1xf32>
    %12 = arith.mulf %10, %11 : vector<16x1xf32>
    %13 = vector.broadcast %12 : vector<16x1xf32> to vector<16x128xf32>
    %14 = arith.subf %8, %13 : vector<16x128xf32>
    %15 = vector.extract_strided_slice %3 {offsets = [3, 0], sizes = [1, 128], strides = [1, 1]} : vector<4x128xf32> to vector<1x128xf32>
    %16 = vector.broadcast %15 : vector<1x128xf32> to vector<16x128xf32>
    %17 = arith.mulf %14, %16 : vector<16x128xf32>
    %18 = arith.mulf %17, %17 : vector<16x128xf32>
    %cst_8 = arith.constant dense<0.000000e+00> : vector<16xf32>
    %19 = vector.multi_reduction <add>, %18, %cst_8 [1] : vector<16x128xf32> to vector<16xf32>
    %20 = vector.shape_cast %19 : vector<16xf32> to vector<16x1xf32>
    %cst_9 = arith.constant 3.125000e-02 : f32
    %21 = vector.broadcast %cst_9 : f32 to vector<16x1xf32>
    %22 = arith.mulf %20, %21 : vector<16x1xf32>
    %cst_10 = arith.constant 9.99999974E-6 : f32
    %23 = vector.broadcast %cst_10 : f32 to vector<16x1xf32>
    %24 = arith.addf %22, %23 : vector<16x1xf32>
    %25 = math.rsqrt %24 : vector<16x1xf32>
    %26 = vector.broadcast %25 : vector<16x1xf32> to vector<16x128xf32>
    %27 = arith.mulf %17, %26 : vector<16x128xf32>
    %28 = vector.extract_strided_slice %3 {offsets = [1, 0], sizes = [1, 128], strides = [1, 1]} : vector<4x128xf32> to vector<1x128xf32>
    %29 = vector.broadcast %28 : vector<1x128xf32> to vector<16x128xf32>
    %30 = arith.mulf %27, %29 : vector<16x128xf32>
    %31 = vector.extract_strided_slice %3 {offsets = [2, 0], sizes = [1, 128], strides = [1, 1]} : vector<4x128xf32> to vector<1x128xf32>
    %32 = vector.broadcast %31 : vector<1x128xf32> to vector<16x128xf32>
    %33 = arith.addf %30, %32 : vector<16x128xf32>
    %34 = arith.truncf %33 : vector<16x128xf32> to vector<16x128xbf16>
    %c0_11 = arith.constant 0 : index
    %c0_12 = arith.constant 0 : index
    %c0_13 = arith.constant 0 : index
    %35 = vector.load %arg4[%c0_11, %c0_12, %c0_13] : memref<2x128x128xbf16, #tpu.memory_space<vmem>>, vector<1x128x128xbf16>
    %36 = vector.shape_cast %35 : vector<1x128x128xbf16> to vector<128x128xbf16>
    %cst_14 = arith.constant dense<0.000000e+00> : vector<16x128xf32>
    %37 = tpu.matmul %34, %36, %cst_14 {dimension_numbers = #tpu.dot_dimension_numbers<[1], [0], [0], [1], [0, 0, 1, 1], [], []>} : vector<16x128xbf16>, vector<128x128xbf16>, vector<16x128xf32> -> vector<16x128xf32>
    %c0_15 = arith.constant 0 : index
    %c0_16 = arith.constant 0 : index
    %c0_17 = arith.constant 0 : index
    %38 = vector.load %arg5[%c0_15, %c0_16, %c0_17] : memref<2x4x128xf32, #tpu.memory_space<vmem>>, vector<1x4x128xf32>
    %39 = vector.shape_cast %38 : vector<1x4x128xf32> to vector<4x128xf32>
    %40 = vector.extract_strided_slice %39 {offsets = [0, 0], sizes = [1, 128], strides = [1, 1]} : vector<4x128xf32> to vector<1x128xf32>
    %41 = vector.broadcast %40 : vector<1x128xf32> to vector<16x128xf32>
    %42 = arith.addf %37, %41 : vector<16x128xf32>
    %cst_18 = arith.constant 0.000000e+00 : f32
    %43 = vector.broadcast %cst_18 : f32 to vector<16x128xf32>
    %44 = arith.maximumf %42, %43 : vector<16x128xf32>
    %cst_19 = arith.constant dense<0.000000e+00> : vector<16xf32>
    %45 = vector.multi_reduction <add>, %44, %cst_19 [1] : vector<16x128xf32> to vector<16xf32>
    %46 = vector.shape_cast %45 : vector<16xf32> to vector<16x1xf32>
    %cst_20 = arith.constant 3.125000e-02 : f32
    %47 = vector.broadcast %cst_20 : f32 to vector<16x1xf32>
    %48 = arith.mulf %46, %47 : vector<16x1xf32>
    %49 = vector.broadcast %48 : vector<16x1xf32> to vector<16x128xf32>
    %50 = arith.subf %44, %49 : vector<16x128xf32>
    %51 = vector.extract_strided_slice %39 {offsets = [3, 0], sizes = [1, 128], strides = [1, 1]} : vector<4x128xf32> to vector<1x128xf32>
    %52 = vector.broadcast %51 : vector<1x128xf32> to vector<16x128xf32>
    %53 = arith.mulf %50, %52 : vector<16x128xf32>
    %54 = arith.mulf %53, %53 : vector<16x128xf32>
    %cst_21 = arith.constant dense<0.000000e+00> : vector<16xf32>
    %55 = vector.multi_reduction <add>, %54, %cst_21 [1] : vector<16x128xf32> to vector<16xf32>
    %56 = vector.shape_cast %55 : vector<16xf32> to vector<16x1xf32>
    %cst_22 = arith.constant 3.125000e-02 : f32
    %57 = vector.broadcast %cst_22 : f32 to vector<16x1xf32>
    %58 = arith.mulf %56, %57 : vector<16x1xf32>
    %cst_23 = arith.constant 9.99999974E-6 : f32
    %59 = vector.broadcast %cst_23 : f32 to vector<16x1xf32>
    %60 = arith.addf %58, %59 : vector<16x1xf32>
    %61 = math.rsqrt %60 : vector<16x1xf32>
    %62 = vector.broadcast %61 : vector<16x1xf32> to vector<16x128xf32>
    %63 = arith.mulf %53, %62 : vector<16x128xf32>
    %64 = vector.extract_strided_slice %39 {offsets = [1, 0], sizes = [1, 128], strides = [1, 1]} : vector<4x128xf32> to vector<1x128xf32>
    %65 = vector.broadcast %64 : vector<1x128xf32> to vector<16x128xf32>
    %66 = arith.mulf %63, %65 : vector<16x128xf32>
    %67 = vector.extract_strided_slice %39 {offsets = [2, 0], sizes = [1, 128], strides = [1, 1]} : vector<4x128xf32> to vector<1x128xf32>
    %68 = vector.broadcast %67 : vector<1x128xf32> to vector<16x128xf32>
    %69 = arith.addf %66, %68 : vector<16x128xf32>
    %70 = arith.truncf %69 : vector<16x128xf32> to vector<16x128xbf16>
    %c1 = arith.constant 1 : index
    %c0_24 = arith.constant 0 : index
    %c0_25 = arith.constant 0 : index
    %71 = vector.load %arg4[%c1, %c0_24, %c0_25] : memref<2x128x128xbf16, #tpu.memory_space<vmem>>, vector<1x128x128xbf16>
    %72 = vector.shape_cast %71 : vector<1x128x128xbf16> to vector<128x128xbf16>
    %cst_26 = arith.constant dense<0.000000e+00> : vector<16x128xf32>
    %73 = tpu.matmul %70, %72, %cst_26 {dimension_numbers = #tpu.dot_dimension_numbers<[1], [0], [0], [1], [0, 0, 1, 1], [], []>} : vector<16x128xbf16>, vector<128x128xbf16>, vector<16x128xf32> -> vector<16x128xf32>
    %c1_27 = arith.constant 1 : index
    %c0_28 = arith.constant 0 : index
    %c0_29 = arith.constant 0 : index
    %74 = vector.load %arg5[%c1_27, %c0_28, %c0_29] : memref<2x4x128xf32, #tpu.memory_space<vmem>>, vector<1x4x128xf32>
    %75 = vector.shape_cast %74 : vector<1x4x128xf32> to vector<4x128xf32>
    %76 = vector.extract_strided_slice %75 {offsets = [0, 0], sizes = [1, 128], strides = [1, 1]} : vector<4x128xf32> to vector<1x128xf32>
    %77 = vector.broadcast %76 : vector<1x128xf32> to vector<16x128xf32>
    %78 = arith.addf %73, %77 : vector<16x128xf32>
    %cst_30 = arith.constant 0.000000e+00 : f32
    %79 = vector.broadcast %cst_30 : f32 to vector<16x128xf32>
    %80 = arith.maximumf %78, %79 : vector<16x128xf32>
    %cst_31 = arith.constant dense<0.000000e+00> : vector<16xf32>
    %81 = vector.multi_reduction <add>, %80, %cst_31 [1] : vector<16x128xf32> to vector<16xf32>
    %82 = vector.shape_cast %81 : vector<16xf32> to vector<16x1xf32>
    %cst_32 = arith.constant 3.125000e-02 : f32
    %83 = vector.broadcast %cst_32 : f32 to vector<16x1xf32>
    %84 = arith.mulf %82, %83 : vector<16x1xf32>
    %85 = vector.broadcast %84 : vector<16x1xf32> to vector<16x128xf32>
    %86 = arith.subf %80, %85 : vector<16x128xf32>
    %87 = vector.extract_strided_slice %75 {offsets = [3, 0], sizes = [1, 128], strides = [1, 1]} : vector<4x128xf32> to vector<1x128xf32>
    %88 = vector.broadcast %87 : vector<1x128xf32> to vector<16x128xf32>
    %89 = arith.mulf %86, %88 : vector<16x128xf32>
    %90 = arith.mulf %89, %89 : vector<16x128xf32>
    %cst_33 = arith.constant dense<0.000000e+00> : vector<16xf32>
    %91 = vector.multi_reduction <add>, %90, %cst_33 [1] : vector<16x128xf32> to vector<16xf32>
    %92 = vector.shape_cast %91 : vector<16xf32> to vector<16x1xf32>
    %cst_34 = arith.constant 3.125000e-02 : f32
    %93 = vector.broadcast %cst_34 : f32 to vector<16x1xf32>
    %94 = arith.mulf %92, %93 : vector<16x1xf32>
    %cst_35 = arith.constant 9.99999974E-6 : f32
    %95 = vector.broadcast %cst_35 : f32 to vector<16x1xf32>
    %96 = arith.addf %94, %95 : vector<16x1xf32>
    %97 = math.rsqrt %96 : vector<16x1xf32>
    %98 = vector.broadcast %97 : vector<16x1xf32> to vector<16x128xf32>
    %99 = arith.mulf %89, %98 : vector<16x128xf32>
    %100 = vector.extract_strided_slice %75 {offsets = [1, 0], sizes = [1, 128], strides = [1, 1]} : vector<4x128xf32> to vector<1x128xf32>
    %101 = vector.broadcast %100 : vector<1x128xf32> to vector<16x128xf32>
    %102 = arith.mulf %99, %101 : vector<16x128xf32>
    %103 = vector.extract_strided_slice %75 {offsets = [2, 0], sizes = [1, 128], strides = [1, 1]} : vector<4x128xf32> to vector<1x128xf32>
    %104 = vector.broadcast %103 : vector<1x128xf32> to vector<16x128xf32>
    %105 = arith.addf %102, %104 : vector<16x128xf32>
    %c0_36 = arith.constant 0 : index
    %c0_37 = arith.constant 0 : index
    %106 = vector.load %arg6[%c0_36, %c0_37] : memref<16x128xf32, #tpu.memory_space<vmem>>, vector<16x128xf32>
    tpu.vector_store %arg6[%c0_36, %c0_37], %105 {strides = array<i32>} : memref<16x128xf32, #tpu.memory_space<vmem>>, vector<16x128xf32>,
    return
  }
  func.func @transform_0(%arg0: i32) -> (i32, i32) {
    %c0_i32 = arith.constant 0 : i32
    %c0_i32_0 = arith.constant 0 : i32
    return %arg0, %c0_i32 : i32, i32
  }
  func.func @transform_1(%arg0: i32) -> (i32, i32) {
    %c0_i32 = arith.constant 0 : i32
    %c0_i32_0 = arith.constant 0 : i32
    %c0_i32_1 = arith.constant 0 : i32
    return %c0_i32, %c0_i32_0 : i32, i32
  }
  func.func @transform_2(%arg0: i32) -> (i32, i32) {
    %c0_i32 = arith.constant 0 : i32
    %c0_i32_0 = arith.constant 0 : i32
    %c0_i32_1 = arith.constant 0 : i32
    return %c0_i32, %c0_i32_0 : i32, i32
  }
  func.func @transform_3(%arg0: i32) -> (i32, i32, i32) {
    %c0_i32 = arith.constant 0 : i32
    %c0_i32_0 = arith.constant 0 : i32
    %c0_i32_1 = arith.constant 0 : i32
    %c0_i32_2 = arith.constant 0 : i32
    return %c0_i32, %c0_i32_0, %c0_i32_1 : i32, i32, i32
  }
  func.func @transform_4(%arg0: i32) -> (i32, i32, i32) {
    %c0_i32 = arith.constant 0 : i32
    %c0_i32_0 = arith.constant 0 : i32
    %c0_i32_1 = arith.constant 0 : i32
    %c0_i32_2 = arith.constant 0 : i32
    return %c0_i32, %c0_i32_0, %c0_i32_1 : i32, i32, i32
  }
  func.func @transform_5(%arg0: i32) -> (i32, i32) {
    %c0_i32 = arith.constant 0 : i32
    %c0_i32_0 = arith.constant 0 : i32
    return %arg0, %c0_i32 : i32, i32
  }
}

</mosaic_0001>

<bundles_post_ra>
// kernel: tpu_custom_call.1
= control target key start
LH: loop header
LB: loop body
LE: loop exit
PB: predicated region body
PF: predicated region fallthrough
CT: control target
= control target key end

     0   :  { %10 = vsyncpa [#allocation3], 0  ;;  %s1000_s0 = inlined_call_operand.hbm [shape: bf16[16,128], index: 0, kind: input, shape index: {}]   ;;  %s1001_s1 = inlined_call_operand.hbm [shape: bf16[128,128], index: 1, kind: input, shape index: {}]   ;;  %s1002_s2 = inlined_call_operand.hbm [shape: f32[4,128], index: 2, kind: input, shape index: {}]   ;;  %s1003_s3 = inlined_call_operand.hbm [shape: bf16[2,128,128], index: 3, kind: input, shape index: {}]   ;;  %s1004_s4 = inlined_call_operand.hbm [shape: f32[2,4,128], index: 4, kind: input, shape index: {}]   ;;  %s1005_s5 = inlined_call_operand.hbm [shape: f32[16,128], index: 5, kind: output, shape index: {}]  }
   0x1   :  { %11 = vsyncpa [#allocation6], 0 }
   0x2   :  { %12 = vsyncpa [#allocation9], 0 }
   0x3   :  { %13 = vsyncpa [#allocation4], 0  ;;  %s866_s18 = smov [#allocation5]   ;;  %s867_s20 = smov [#allocation8]  }
   0x4   :  { %s31_s19 = sshll.u32 %s866_s18, 4  ;;  %s53_s21 = sshll.u32 %s867_s20, 4  ;;  %s32_s19 = int_to_ptr.vmem [resolvable:$true] %s31_s19  ;;  %s54_s21 = int_to_ptr.vmem [resolvable:$true] %s53_s21 }
   0x5   :  { %s746_s22 = scalar_lea.vmem %s32_s19, 1024  ;;  %p751_p1 = scmp.lt.s32.totalorder %s32_s19, %s32_s19 }
   0x6   :  { %p747_p0 = scmp.ne.s32.totalorder %s32_s19, %s746_s22  ;;  %p752_p2 = scmp.lt.s32.totalorder %s746_s22, %s746_s22 }
   0x8   :  { %p753_p3 = por %p752_p2, %p751_p1 }
   0xa   :  { %p754_p4 = pnand %p753_p3, %p747_p0 }
   0xc   :  { %757 = shalt.err (!%p754_p4)
}
   0xd   :  { %s868_s23 = smov 64   ;;  %s869_s24 = smov 4  }
   0xe   :  { %37 = dma.hbm_to_vmem [thread:$0]  %s1001_s1, 1024, %s32_s19, [#allocation6], %s868_s23, %s868_s23, %s869_s24  }
   0xf   :  { %s766_s27 = scalar_lea.vmem %s54_s21, 2048  ;;  %p771_p6 = scmp.lt.s32.totalorder %s54_s21, %s54_s21 }
  0x10   :  { %p767_p5 = scmp.ne.s32.totalorder %s54_s21, %s766_s27  ;;  %p772_p7 = scmp.lt.s32.totalorder %s766_s27, %s766_s27 }
  0x12   :  { %p773_p8 = por %p772_p7, %p771_p6 }
  0x14   :  { %p774_p9 = pnand %p773_p8, %p767_p5 }
  0x16   :  { %777 = shalt.err (!%p774_p9)
}
  0x17   :  { %59 = dma.hbm_to_vmem [thread:$0]  %s1003_s3, 2048, %s54_s21, [#allocation9], %s868_s23, %s868_s23, %s869_s24  }
  0x18   :  { %s870_s30 = smov [#allocation2]   ;;  %s871_s7 = smov [#allocation7]  }
  0x19   :  { %s19_s6 = sshll.u32 %s870_s30, 4  ;;  %s44_s8 = sshll.u32 %s871_s7, 4  ;;  %s20_s6 = int_to_ptr.vmem [resolvable:$true] %s19_s6  ;;  %s45_s8 = int_to_ptr.vmem [resolvable:$true] %s44_s8 }
  0x1a   :  { %s786_s1 = scalar_lea.vmem %s20_s6, 128  ;;  %p791_p11 = scmp.lt.s32.totalorder %s20_s6, %s20_s6 }
  0x1b   :  { %p787_p10 = scmp.ne.s32.totalorder %s20_s6, %s786_s1  ;;  %p792_p12 = scmp.lt.s32.totalorder %s786_s1, %s786_s1 }
  0x1d   :  { %p793_p13 = por %p792_p12, %p791_p11 }
  0x1f   :  { %p794_p0 = pnand %p793_p13, %p787_p10 }
  0x21   :  { %797 = shalt.err (!%p794_p0)
}
  0x22   :  { %25 = dma.hbm_to_vmem [thread:$0]  %s1000_s0, 128, %s20_s6, [#allocation3], %s868_s23, %s868_s23, %s869_s24  }
  0x23   :  { %s806_s3 = scalar_lea.vmem %s45_s8, 64  ;;  %p811_p2 = scmp.lt.s32.totalorder %s45_s8, %s45_s8 }
  0x24   :  { %p807_p1 = scmp.ne.s32.totalorder %s45_s8, %s806_s3  ;;  %p812_p3 = scmp.lt.s32.totalorder %s806_s3, %s806_s3 }
  0x26   :  { %p813_p4 = por %p812_p3, %p811_p2 }
  0x28   :  { %p814_p5 = pnand %p813_p4, %p807_p1 }
  0x2a   :  { %817 = shalt.err (!%p814_p5)
}
  0x2b   :  { %47 = dma.hbm_to_vmem [thread:$0]  %s1002_s2, 64, %s45_s8, [#allocation6]  }
  0x2c   :  { %s872_s13 = smov [#allocation10]  }
  0x2d   :  { %s65_s14 = sshll.u32 %s872_s13, 4  ;;  %s66_s14 = int_to_ptr.vmem [resolvable:$true] %s65_s14 }
  0x2e   :  { %s826_s15 = scalar_lea.vmem %s66_s14, 128  ;;  %p831_p7 = scmp.lt.s32.totalorder %s66_s14, %s66_s14 }
  0x2f   :  { %p827_p6 = scmp.ne.s32.totalorder %s66_s14, %s826_s15  ;;  %p832_p8 = scmp.lt.s32.totalorder %s826_s15, %s826_s15 }
  0x31   :  { %p833_p9 = por %p832_p8, %p831_p7 }
  0x33   :  { %p834_p10 = pnand %p833_p9, %p827_p6 }
  0x35   :  { %837 = shalt.err (!%p834_p10)
}
  0x36   :  { %71 = dma.hbm_to_vmem [thread:$0]  %s1004_s4, 128, %s66_s14, [#allocation9], %s868_s23, %s868_s23, %s869_s24  }
  0x37   :  { %858 = dma.done.wait [#allocation3], 128  }
  0x38   :  { %859 = vsyncadd [#allocation3], 4294967168 }
  0x39   :  { %860 = dma.done.wait [#allocation6], 1088  }
  0x3a   :  { %861 = vsyncadd [#allocation6], 4294966208 }
  0x3b   :  { %862 = dma.done.wait [#allocation9], 2176  }
  0x3c   :  { %863 = vsyncadd [#allocation9], 4294965120  ;;  %v873_v0 = vmov 0.0   ;;  %vm874_vm0 = vmmov 0   ;;  %v701_v1 = vld [vmem:[#allocation5 + $0x38] sm:$0xff]   ;;  %v702_v2 = vld [vmem:[#allocation5 + $0x30] sm:$0xff]   ;;  %v107_v10 = vlaneseq }
  0x3d   :  { %629 = vmatprep.subr.bf16.mxu0 %v873_v0  ;;  %645 = vmatprep.mubr.msk.bf16.mxu0 %vm874_vm0, %v873_v0  ;;  %v703_v3 = vld [vmem:[#allocation5 + $0x28] sm:$0xff]   ;;  %v704_v4 = vld [vmem:[#allocation5 + $0x20] sm:$0xff]   ;;  %v705_v5 = vld [vmem:[#allocation5 + $0x18] sm:$0xff]   ;;  %s875_s2 = smov [#allocation11]  }
  0x3e   :  { %649 = vmatprep.subr.bf16.mxu1 %v873_v0  ;;  %665 = vmatprep.mubr.msk.bf16.mxu1 %vm874_vm0, %v873_v0  ;;  %v706_v6 = vld [vmem:[#allocation5 + $0x10] sm:$0xff]   ;;  %v707_v7 = vld [vmem:[#allocation5 + $0x8] sm:$0xff]   ;;  %v708_v8 = vld [vmem:[#allocation5] sm:$0xff]   ;;  %v951_v11 = vshrl.u32 %v107_v10, 7  ;;  %s563_s4 = sshll.u32 %s875_s2, 4  ;;  %s564_s4 = int_to_ptr.vmem [resolvable:$true] %s563_s4 }
  0x3f   :  { %630 = vmatpush3.bf16.msra.mxu0 %v701_v1  ;;  %v709_v9 = vld [vmem:[#allocation2] sm:$0xff]   ;;  %v956_v13 = vld [vmem:[#allocation7] sm:$0xf]  ;;  %v712_v37 = vld [vmem:[#allocation8 + $0x28] sm:$0xff]   ;;  %s838_s17 = scalar_lea.vmem %s564_s4, 256  ;;  %p843_p12 = scmp.lt.s32.totalorder %s564_s4, %s564_s4 }
  0x40   :  { %631 = vmatprep.subr.bf16.mxu0 %v873_v0  ;;  %v954_v12 = vsub.s32 0, %v951_v11  ;;  %v710_v23 = vld [vmem:[#allocation8 + $0x38] sm:$0xff]   ;;  %v962_v24 = vsub.s32 3, %v951_v11  ;;  %v711_v36 = vld [vmem:[#allocation8 + $0x30] sm:$0xff]   ;;  %v713_v38 = vld [vmem:[#allocation8 + $0x20] sm:$0xff]   ;;  %v973_v49 = vsub.s32 1, %v951_v11  ;;  %p839_p11 = scmp.ne.s32.totalorder %s564_s4, %s838_s17  ;;  %p844_p13 = scmp.lt.s32.totalorder %s838_s17, %s838_s17 }
  0x41   :  { %650 = vmatpush3.bf16.msra.mxu1 %v710_v23  ;;  %v714_v39 = vld [vmem:[#allocation8 + $0x18] sm:$0xff]   ;;  %v715_v40 = vld [vmem:[#allocation8 + $0x10] sm:$0xff]   ;;  %v716_v41 = vld [vmem:[#allocation8 + $0x8] sm:$0xff]   ;;  %v978_v53 = vsub.s32 2, %v951_v11 }
  0x42   :  { %v110_v14 = vrot.slane %v956_v13, %v954_v12  ;;  %651 = vmatprep.subr.bf16.mxu1 %v873_v0  ;;  %v219_v27 = vrot.slane %v956_v13, %v962_v24  ;;  %v717_v42 = vld [vmem:[#allocation8] sm:$0xff]   ;;  %v239_v52 = vrot.slane %v956_v13, %v973_v49  ;;  %v720_v23 = vld [vmem:[#allocation8 + $0x68] sm:$0xff]   ;;  %p845_p0 = por %p844_p13, %p843_p12 }
  0x43   :  { %632 = vmatpush3.bf16.msra.mxu0 %v702_v2  ;;  %v245_v57 = vrot.slane %v956_v13, %v978_v53  ;;  %v265_v62 = vld [vmem:[#allocation10] sm:$0xf] }
  0x44   :  { %633 = vmatprep.subr.bf16.mxu0 %v873_v0  ;;  %v269_v63 = vrot.slane %v265_v62, %v954_v12  ;;  %v372_v13 = vrot.slane %v265_v62, %v962_v24  ;;  %p846_p1 = pnand %p845_p0, %p839_p11 }
  0x45   :  { %652 = vmatpush3.bf16.msra.mxu1 %v711_v36 }
  0x46   :  { %653 = vmatprep.subr.bf16.mxu1 %v873_v0 }
  0x47   :  { %634 = vmatpush3.bf16.msra.mxu0 %v703_v3 }
  0x48   :  { %635 = vmatprep.subr.bf16.mxu0 %v873_v0 }
  0x49   :  { %654 = vmatpush3.bf16.msra.mxu1 %v712_v37  ;;  %v392_v37 = vrot.slane %v265_v62, %v973_v49 }
  0x4a   :  { %655 = vmatprep.subr.bf16.mxu1 %v873_v0 }
  0x4b   :  { %636 = vmatpush3.bf16.msra.mxu0 %v704_v4 }
  0x4c   :  { %637 = vmatprep.subr.bf16.mxu0 %v873_v0 }
  0x4d   :  { %656 = vmatpush3.bf16.msra.mxu1 %v713_v38 }
  0x4e   :  { %657 = vmatprep.subr.bf16.mxu1 %v873_v0 }
  0x4f   :  { %638 = vmatpush3.bf16.msra.mxu0 %v705_v5 }
  0x50   :  { %639 = vmatprep.subr.bf16.mxu0 %v873_v0 }
  0x51   :  { %658 = vmatpush3.bf16.msra.mxu1 %v714_v39 }
  0x52   :  { %659 = vmatprep.subr.bf16.mxu1 %v873_v0 }
  0x53   :  { %640 = vmatpush3.bf16.msra.mxu0 %v706_v6 }
  0x54   :  { %641 = vmatprep.subr.bf16.mxu0 %v873_v0 }
  0x55   :  { %660 = vmatpush3.bf16.msra.mxu1 %v715_v40  ;;  %v398_v40 = vrot.slane %v265_v62, %v978_v53 }
  0x56   :  { %661 = vmatprep.subr.bf16.mxu1 %v873_v0 }
  0x57   :  { %642 = vmatpush3.bf16.msra.mxu0 %v707_v7 }
  0x58   :  { %643 = vmatprep.subr.bf16.mxu0 %v873_v0 }
  0x59   :  { %662 = vmatpush3.bf16.msra.mxu1 %v716_v41 }
  0x5a   :  { %663 = vmatprep.subr.bf16.mxu1 %v873_v0 }
  0x5b   :  { %644 = vmatpush3.bf16.msra.mxu0 %v708_v8 }
  0x5c   :  { %669 = vmatprep.subr.bf16.mxu0 %v873_v0 }
  0x5d   :  { %664 = vmatpush3.bf16.msra.mxu1 %v717_v42 }
  0x5e   :  { %646 = vmatmul.mubr.bf16.vlgmr.msra.gmra.mxu0 %v709_v9  ;;  %v718_v9 = vld [vmem:[#allocation8 + $0x78] sm:$0xff]  }
  0x5f   :  { %685 = vmatprep.mubr.msk.bf16.mxu0 %vm874_vm0, %v873_v0  ;;  %670 = vmatpush3.bf16.msra.mxu0 %v718_v9 }
  0x60   :  { %671 = vmatprep.subr.bf16.mxu0 %v873_v0 }
 0x11e   :  { %v199_v15 = vpop.f32.mrf.mxu0 }
 0x11f   :  { %v200_v16 = vadd.f32 %v199_v15, %v110_v14 }
 0x120   :  { %v647_v17 = vpop.f32.mrf.mxu0 }
 0x121   :  { %v206_v18 = vmax.f32 %v200_v16, 0.0 }
 0x122   :  { %v202_v19 = vpop.f32.mrf.mxu0 }
 0x123   :  { %v203_v20 = vadd.f32 %v202_v19, %v110_v14  ;;  %208 = vadd.xlane.f32.xlu0 %v206_v18 }
 0x124   :  { %v648_v21 = vpop.f32.mrf.mxu0 }
 0x125   :  { %v207_v22 = vmax.f32 %v203_v20, 0.0 }
 0x127   :  { %210 = vadd.xlane.f32.xlu0 %v207_v22 }
 0x1ac   :  { %v209_v25 = vpop.xlane.xlu0 %208 }
 0x1ad   :  { %v212_v26 = vmul.f32 0.03125, %v209_v25  ;;  %v721_v25 = vld [vmem:[#allocation8 + $0x60] sm:$0xff]  }
 0x1af   :  { %v214_v28 = vsub.f32 %v206_v18, %v212_v26  ;;  %v722_v26 = vld [vmem:[#allocation8 + $0x58] sm:$0xff]  }
 0x1b0   :  { %v211_v29 = vpop.xlane.xlu0 %210 }
 0x1b1   :  { %v213_v30 = vmul.f32 0.03125, %v211_v29  ;;  %v220_v31 = vmul.f32 %v219_v27, %v214_v28  ;;  %v724_v28 = vld [vmem:[#allocation8 + $0x48] sm:$0xff]   ;;  %v725_v29 = vld [vmem:[#allocation8 + $0x40] sm:$0xff]  }
 0x1b3   :  { %v215_v32 = vsub.f32 %v207_v22, %v213_v30  ;;  %v222_v33 = vmul.f32 %v220_v31, %v220_v31  ;;  %v719_v22 = vld [vmem:[#allocation8 + $0x70] sm:$0xff]  }
 0x1b4   :  { %672 = vmatpush3.bf16.msra.mxu0 %v719_v22 }
 0x1b5   :  { %224 = vadd.xlane.f32.xlu1 %v222_v33  ;;  %v221_v34 = vmul.f32 %v219_v27, %v215_v32  ;;  %673 = vmatprep.subr.bf16.mxu0 %v873_v0  ;;  %v723_v27 = vld [vmem:[#allocation8 + $0x50] sm:$0xff]  }
 0x1b7   :  { %v223_v35 = vmul.f32 %v221_v34, %v221_v34 }
 0x1b8   :  { %674 = vmatpush3.bf16.msra.mxu0 %v720_v23 }
 0x1b9   :  { %226 = vadd.xlane.f32.xlu1 %v223_v35  ;;  %675 = vmatprep.subr.bf16.mxu0 %v873_v0 }
 0x1bc   :  { %676 = vmatpush3.bf16.msra.mxu0 %v721_v25 }
 0x1bd   :  { %677 = vmatprep.subr.bf16.mxu0 %v873_v0 }
 0x1c0   :  { %678 = vmatpush3.bf16.msra.mxu0 %v722_v26 }
 0x1c1   :  { %679 = vmatprep.subr.bf16.mxu0 %v873_v0 }
 0x1c4   :  { %680 = vmatpush3.bf16.msra.mxu0 %v723_v27 }
 0x1c5   :  { %681 = vmatprep.subr.bf16.mxu0 %v873_v0 }
 0x1c8   :  { %682 = vmatpush3.bf16.msra.mxu0 %v724_v28 }
 0x1c9   :  { %683 = vmatprep.subr.bf16.mxu0 %v873_v0 }
 0x1cc   :  { %684 = vmatpush3.bf16.msra.mxu0 %v725_v29 }
 0x23e   :  { %v225_v43 = vpop.xlane.xlu1 %224 }
 0x23f   :  { %v228_v44 = vmul.f32 0.03125, %v225_v43 }
 0x241   :  { %v230_v45 = vadd.f32 1e-05, %v228_v44 }
 0x242   :  { %v227_v46 = vpop.xlane.xlu1 %226 }
 0x243   :  { %726 = vrsqrt.f32 %v230_v45  ;;  %v229_v47 = vmul.f32 0.03125, %v227_v46  ;;  %v420_v46 = vld [vmem:[#allocation10 + $0x4] sm:$0xf] }
 0x245   :  { %v231_v48 = vadd.f32 1e-05, %v229_v47  ;;  %v424_v47 = vrot.slane %v420_v46, %v954_v12 }
 0x247   :  { %728 = vrsqrt.f32 %v231_v48 }
 0x250   :  { %v727_v50 = vpop.eup %726 }
 0x251   :  { %v234_v51 = vmul.f32 %v727_v50, %v220_v31 }
 0x253   :  { %v240_v56 = vmul.f32 %v239_v52, %v234_v51 }
 0x254   :  { %v729_v54 = vpop.eup %728 }
 0x255   :  { %v235_v55 = vmul.f32 %v729_v54, %v221_v34  ;;  %v246_v59 = vadd.f32 %v245_v57, %v240_v56 }
 0x257   :  { %v241_v58 = vmul.f32 %v239_v52, %v235_v55 }
 0x259   :  { %v247_v60 = vadd.f32 %v245_v57, %v241_v58 }
 0x25b   :  { %v248_v61 = vpack.c.bf16 %v247_v60, %v246_v59  ;;  %v527_v60 = vrot.slane %v420_v46, %v962_v24  ;;  %v547_v24 = vrot.slane %v420_v46, %v973_v49 }
 0x25d   :  { %666 = vmatmul.mubr.bf16.vlgmr.msra.gmra.mxu1 %v248_v61 }
 0x31d   :  { %v352_v1 = vpop.f32.mrf.mxu1 }
 0x31e   :  { %v353_v2 = vadd.f32 %v352_v1, %v269_v63 }
 0x31f   :  { %v667_v3 = vpop.f32.mrf.mxu1 }
 0x320   :  { %v359_v4 = vmax.f32 %v353_v2, 0.0 }
 0x321   :  { %v355_v5 = vpop.f32.mrf.mxu1 }
 0x322   :  { %v356_v6 = vadd.f32 %v355_v5, %v269_v63  ;;  %361 = vadd.xlane.f32.xlu0 %v359_v4 }
 0x323   :  { %v668_v7 = vpop.f32.mrf.mxu1 }
 0x324   :  { %v360_v8 = vmax.f32 %v356_v6, 0.0 }
 0x326   :  { %363 = vadd.xlane.f32.xlu1 %v360_v8 }
 0x3ab   :  { %v362_v10 = vpop.xlane.xlu0 %361 }
 0x3ac   :  { %v365_v11 = vmul.f32 0.03125, %v362_v10 }
 0x3ae   :  { %v367_v14 = vsub.f32 %v359_v4, %v365_v11 }
 0x3af   :  { %v364_v15 = vpop.xlane.xlu1 %363 }
 0x3b0   :  { %v366_v16 = vmul.f32 0.03125, %v364_v15  ;;  %v373_v17 = vmul.f32 %v372_v13, %v367_v14 }
 0x3b2   :  { %v368_v18 = vsub.f32 %v360_v8, %v366_v16  ;;  %v375_v19 = vmul.f32 %v373_v17, %v373_v17 }
 0x3b4   :  { %377 = vadd.xlane.f32.xlu0 %v375_v19  ;;  %v374_v20 = vmul.f32 %v372_v13, %v368_v18  ;;  %v553_v13 = vrot.slane %v420_v46, %v978_v53 }
 0x3b6   :  { %v376_v21 = vmul.f32 %v374_v20, %v374_v20 }
 0x3b8   :  { %379 = vadd.xlane.f32.xlu1 %v376_v21 }
 0x43d   :  { %v378_v30 = vpop.xlane.xlu0 %377 }
 0x43e   :  { %v381_v31 = vmul.f32 0.03125, %v378_v30 }
 0x440   :  { %v383_v32 = vadd.f32 1e-05, %v381_v31 }
 0x441   :  { %v380_v33 = vpop.xlane.xlu1 %379 }
 0x442   :  { %730 = vrsqrt.f32 %v383_v32  ;;  %v382_v34 = vmul.f32 0.03125, %v380_v33 }
 0x444   :  { %v384_v35 = vadd.f32 1e-05, %v382_v34 }
 0x446   :  { %732 = vrsqrt.f32 %v384_v35 }
 0x44f   :  { %v731_v36 = vpop.eup %730 }
 0x450   :  { %v387_v38 = vmul.f32 %v731_v36, %v373_v17 }
 0x452   :  { %v393_v42 = vmul.f32 %v392_v37, %v387_v38 }
 0x453   :  { %v733_v39 = vpop.eup %732 }
 0x454   :  { %v388_v41 = vmul.f32 %v733_v39, %v374_v20  ;;  %v399_v0 = vadd.f32 %v398_v40, %v393_v42 }
 0x456   :  { %v394_v43 = vmul.f32 %v392_v37, %v388_v41 }
 0x458   :  { %v400_v44 = vadd.f32 %v398_v40, %v394_v43 }
 0x45a   :  { %v401_v45 = vpack.c.bf16 %v400_v44, %v399_v0 }
 0x45c   :  { %686 = vmatmul.mubr.bf16.vlgmr.msra.gmra.mxu0 %v401_v45 }
 0x51c   :  { %v507_v48 = vpop.f32.mrf.mxu0 }
 0x51d   :  { %v508_v50 = vadd.f32 %v507_v48, %v424_v47 }
 0x51e   :  { %v687_v51 = vpop.f32.mrf.mxu0 }
 0x51f   :  { %v514_v52 = vmax.f32 %v508_v50, 0.0 }
 0x520   :  { %v510_v54 = vpop.f32.mrf.mxu0 }
 0x521   :  { %v511_v55 = vadd.f32 %v510_v54, %v424_v47  ;;  %516 = vadd.xlane.f32.xlu0 %v514_v52 }
 0x522   :  { %v688_v56 = vpop.f32.mrf.mxu0 }
 0x523   :  { %v515_v57 = vmax.f32 %v511_v55, 0.0 }
 0x525   :  { %518 = vadd.xlane.f32.xlu1 %v515_v57 }
 0x5aa   :  { %v517_v58 = vpop.xlane.xlu0 %516 }
 0x5ab   :  { %v520_v59 = vmul.f32 0.03125, %v517_v58 }
 0x5ad   :  { %v522_v61 = vsub.f32 %v514_v52, %v520_v59 }
 0x5ae   :  { %v519_v62 = vpop.xlane.xlu1 %518 }
 0x5af   :  { %v521_v63 = vmul.f32 0.03125, %v519_v62  ;;  %v528_v1 = vmul.f32 %v527_v60, %v522_v61 }
 0x5b1   :  { %v523_v2 = vsub.f32 %v515_v57, %v521_v63  ;;  %v530_v12 = vmul.f32 %v528_v1, %v528_v1 }
 0x5b3   :  { %532 = vadd.xlane.f32.xlu0 %v530_v12  ;;  %v529_v3 = vmul.f32 %v527_v60, %v523_v2 }
 0x5b5   :  { %v531_v4 = vmul.f32 %v529_v3, %v529_v3 }
 0x5b7   :  { %534 = vadd.xlane.f32.xlu1 %v531_v4 }
 0x63c   :  { %v533_v5 = vpop.xlane.xlu0 %532 }
 0x63d   :  { %v536_v6 = vmul.f32 0.03125, %v533_v5 }
 0x63f   :  { %v538_v7 = vadd.f32 1e-05, %v536_v6 }
 0x640   :  { %v535_v8 = vpop.xlane.xlu1 %534 }
 0x641   :  { %734 = vrsqrt.f32 %v538_v7  ;;  %v537_v9 = vmul.f32 0.03125, %v535_v8 }
 0x643   :  { %v539_v10 = vadd.f32 1e-05, %v537_v9 }
 0x645   :  { %736 = vrsqrt.f32 %v539_v10 }
 0x64e   :  { %v735_v11 = vpop.eup %734 }
 0x64f   :  { %v542_v14 = vmul.f32 %v735_v11, %v528_v1 }
 0x651   :  { %v548_v15 = vmul.f32 %v547_v24, %v542_v14 }
 0x652   :  { %v737_v16 = vpop.eup %736 }
 0x653   :  { %v543_v17 = vmul.f32 %v737_v16, %v529_v3  ;;  %v554_v18 = vadd.f32 %v553_v13, %v548_v15 }
 0x655   :  { %v549_v19 = vmul.f32 %v547_v24, %v543_v17  ;;  %556 = vst [vmem:[#allocation11] sm:$0xff] %v554_v18 }
 0x657   :  { %v555_v20 = vadd.f32 %v553_v13, %v549_v19 }
 0x659   :  { %557 = vst [vmem:[#allocation11 + $0x8] sm:$0xff] %v555_v20 }
 0x65a   :  { %849 = shalt.err (!%p846_p1)
}
 0x65b   :  { %s876_s18 = smov 128   ;;  %s877_s19 = smov 8  }
 0x65c   :  { %569 = dma.vmem_to_hbm [thread:$0]  %s564_s4, 256, %s1005_s5, [#allocation4], %s876_s18, %s876_s18, %s877_s19  }
 0x65d   :  { %864 = dma.done.wait [#allocation4], 256  }
 0x65e   :  { %865 = vsyncadd [#allocation4], 4294967040 }
 0x65f   :  { %573 = vsyncpa [#allocation3], 1 }
 0x660   :  { %574 = vsyncpa [#allocation6], 1 }
 0x661   :  { %575 = vsyncpa [#allocation9], 1 }
 0x662   :  { %576 = vsyncpa [#allocation4], 1 }

</bundles_post_ra>
